<compile_context>
chip_gen: v5e
topology: v5e:2x2
jax: 0.10.0
libtpu: 0.0.40
codegen_flags: <defaults>
</compile_context>

<pallas_src>
import math

import jax
import jax.numpy as jnp
from jax.experimental import pallas as pl
from jax.experimental.pallas import tpu as pltpu


def _softmax_pv(inv_scale_ref, q_ref, k_ref, v_ref):
    """Shared body: scaled scores -> softmax(f32) -> returns (p_f32, v)."""
    inv_scale = inv_scale_ref[0]
    q = q_ref[...].astype(jnp.float32) * inv_scale          # O(TH*S*D) scaling
    k = k_ref[...]
    v = v_ref[...]
    # scores: contract on last dim directly (no k transpose through the XLU).
    s = jnp.einsum("bqd,bkd->bqk", q, k, preferred_element_type=jnp.float32)
    m = jnp.max(s, axis=-1, keepdims=True)
    e = jnp.exp(s - m)
    denom = jnp.sum(e, axis=-1, keepdims=True)
    p = e * (1.0 / denom)                                    # one divide per row
    return p, v


def _attn_kernel_nodrop(inv_scale_ref, q_ref, k_ref, v_ref, o_ref):
    p, v = _softmax_pv(inv_scale_ref, q_ref, k_ref, v_ref)
    out = jnp.einsum("bqk,bkd->bqd", p.astype(v.dtype), v,
                     preferred_element_type=jnp.float32)
    o_ref[...] = out.astype(o_ref.dtype)


def _attn_kernel_drop(inv_scale_ref, q_ref, k_ref, v_ref, mask_ref, o_ref):
    p, v = _softmax_pv(inv_scale_ref, q_ref, k_ref, v_ref)
    # mask already holds {0, 1/(1-p)} -> single multiply (inverted dropout).
    p = p * mask_ref[...]
    out = jnp.einsum("bqk,bkd->bqd", p.astype(v.dtype), v,
                     preferred_element_type=jnp.float32)
    o_ref[...] = out.astype(o_ref.dtype)


def _pick_head_tile(bh, cap=64):
    """Largest divisor of bh that is <= cap (heads batched per grid step)."""
    th = min(bh, cap)
    while bh % th:
        th -= 1
    return th


def sdpa_pallas(q, k, v, scale_factor, dropout_p=0.0, *, dropout_key=None):
    B, H, S, D = q.shape
    BH = B * H
    qf = q.reshape(BH, S, D)
    kf = k.reshape(BH, S, D)
    vf = v.reshape(BH, S, D)

    # Batch TH heads per grid step to amortize the ~0.35us per-step overhead
    # and make the DMAs large enough to matter.
    # TODO(synk): for large S (>= ~2k) switch to flash-style kv tiling so the
    # S x S score tile stays bounded on v7x's 64 MiB VMEM.
    TH = _pick_head_tile(BH)
    grid = (BH // TH,)

    head_spec = pl.BlockSpec((TH, S, D), lambda b: (b, 0, 0))
    smem_spec = pl.BlockSpec(memory_space=pltpu.SMEM)
    out_shape = jax.ShapeDtypeStruct((BH, S, D), q.dtype)
    compiler_params = pltpu.CompilerParams(
        dimension_semantics=("parallel",))   # heads are independent -> megacore

    inv_scale = jnp.asarray([1.0 / float(scale_factor)], jnp.float32)

    dropout_p = float(dropout_p)   # static: specialize the compiled kernel
    if dropout_p == 0.0:
        out = pl.pallas_call(
            _attn_kernel_nodrop,
            out_shape=out_shape,
            grid=grid,
            in_specs=[smem_spec, head_spec, head_spec, head_spec],
            out_specs=head_spec,
            compiler_params=compiler_params,
        )(inv_scale, qf, kf, vf)
    else:
        if dropout_key is None:
            dropout_key = jax.random.PRNGKey(0)
        # Inverted-dropout mask: values are 0 or 1/(1-p). p >= 1 -> all zeros
        # (matches torch.nn.Dropout(p=1) returning zeros, avoids div-by-zero).
        keep_scale = 0.0 if dropout_p >= 1.0 else 1.0 / (1.0 - dropout_p)
        keep = jax.random.bernoulli(dropout_key, 1.0 - min(dropout_p, 1.0),
                                    (BH, S, S))
        mask = keep.astype(jnp.float32) * jnp.float32(keep_scale)
        mask_spec = pl.BlockSpec((TH, S, S), lambda b: (b, 0, 0))
        out = pl.pallas_call(
            _attn_kernel_drop,
            out_shape=out_shape,
            grid=grid,
            in_specs=[smem_spec, head_spec, head_spec, head_spec, mask_spec],
            out_specs=head_spec,
            compiler_params=compiler_params,
        )(inv_scale, qf, kf, vf, mask)
    return out.reshape(B, H, S, D)


def sdpa_reference(q, k, v, scale_factor):
    # pure-JAX reference with dropout disabled (eval-mode semantics)
    qk = jnp.einsum("bhsd,bhtd->bhst", q, k) / scale_factor
    p = jax.nn.softmax(qk, axis=-1)
    return jnp.einsum("bhst,bhtd->bhsd", p, v)


if __name__ == "__main__":
    B, H, S, D = 2, 4, 8, 32
    key = jax.random.PRNGKey(0)
    kq, kk, kv, kd = jax.random.split(key, 4)
    q = jax.random.normal(kq, (B, H, S, D), dtype=jnp.float32)
    k = jax.random.normal(kk, (B, H, S, D), dtype=jnp.float32)
    v = jax.random.normal(kv, (B, H, S, D), dtype=jnp.float32)
    scale_factor = math.sqrt(D)

    # Deterministic path (dropout_p = 0) -> must match the reference.
    out0 = sdpa_pallas(q, k, v, scale_factor, dropout_p=0.0)
    jax.block_until_ready(out0)
    ref0 = sdpa_reference(q, k, v, scale_factor)
    assert jnp.allclose(out0, ref0, atol=1e-5, rtol=1e-5), "mismatch vs reference"

    # Stochastic path with the module's dropout probability (p = 0.1).
    out = sdpa_pallas(q, k, v, scale_factor, dropout_p=0.1, dropout_key=kd)
    jax.block_until_ready(out)
    assert out.shape == (B, H, S, D)
    assert bool(jnp.all(jnp.isfinite(out)))

    print("KERNEL_OK")
</pallas_src>

<mosaic_0001>
module attributes {stable_mosaic.version = 11 : i64} {
  func.func @_attn_kernel_nodrop(%arg0: i32, %arg1: memref<1xf32, #tpu.memory_space<smem>>, %arg2: memref<8x8x32xf32, #tpu.memory_space<vmem>>, %arg3: memref<8x8x32xf32, #tpu.memory_space<vmem>>, %arg4: memref<8x8x32xf32, #tpu.memory_space<vmem>>, %arg5: memref<8x8x32xf32, #tpu.memory_space<vmem>>) attributes {dimension_semantics = [#tpu.dimension_semantics<parallel>], iteration_bounds = array<i64: 1>, scalar_prefetch = 0 : i64, scratch_operands = 0 : i64, tpu.core_type = #tpu.core_type<tc>, window_params = [{transform_indices = @transform_0, window_bounds = array<i64: 1>}, {transform_indices = @transform_1, window_bounds = array<i64: 8, 8, 32>}, {transform_indices = @transform_2, window_bounds = array<i64: 8, 8, 32>}, {transform_indices = @transform_3, window_bounds = array<i64: 8, 8, 32>}, {transform_indices = @transform_4, window_bounds = array<i64: 8, 8, 32>}]} {
    %c0 = arith.constant 0 : index
    %0 = memref.load %arg1[%c0] : memref<1xf32, #tpu.memory_space<smem>>
    %c0_0 = arith.constant 0 : index
    %c0_1 = arith.constant 0 : index
    %c0_2 = arith.constant 0 : index
    %1 = vector.load %arg2[%c0_0, %c0_1, %c0_2] : memref<8x8x32xf32, #tpu.memory_space<vmem>>, vector<8x8x32xf32>
    %2 = vector.broadcast %0 : f32 to vector<8x8x32xf32>
    %3 = arith.mulf %1, %2 : vector<8x8x32xf32>
    %c0_3 = arith.constant 0 : index
    %c0_4 = arith.constant 0 : index
    %c0_5 = arith.constant 0 : index
    %4 = vector.load %arg3[%c0_3, %c0_4, %c0_5] : memref<8x8x32xf32, #tpu.memory_space<vmem>>, vector<8x8x32xf32>
    %c0_6 = arith.constant 0 : index
    %c0_7 = arith.constant 0 : index
    %c0_8 = arith.constant 0 : index
    %5 = vector.load %arg4[%c0_6, %c0_7, %c0_8] : memref<8x8x32xf32, #tpu.memory_space<vmem>>, vector<8x8x32xf32>
    "tpu.trace_start"() <{level = 10 : i32, message = "bqd,bkd->bqk"}> : () -> ()
    %cst = arith.constant dense<0.000000e+00> : vector<8x8x8xf32>
    %6 = tpu.matmul %3, %4, %cst {dimension_numbers = #tpu.dot_dimension_numbers<[2], [2], [1], [1], [0, 0, 0, 1, 1, 1], [0], [0]>} : vector<8x8x32xf32>, vector<8x8x32xf32>, vector<8x8x8xf32> -> vector<8x8x8xf32>
    "tpu.trace_stop"() : () -> ()
    %cst_9 = arith.constant dense<0xFF800000> : vector<8x8xf32>
    %7 = vector.multi_reduction <maximumf>, %6, %cst_9 [2] : vector<8x8x8xf32> to vector<8x8xf32>
    %8 = vector.shape_cast %7 : vector<8x8xf32> to vector<8x8x1xf32>
    %9 = vector.broadcast %8 : vector<8x8x1xf32> to vector<8x8x8xf32>
    %10 = arith.subf %6, %9 : vector<8x8x8xf32>
    %11 = math.exp %10 : vector<8x8x8xf32>
    %cst_10 = arith.constant dense<0.000000e+00> : vector<8x8xf32>
    %12 = vector.multi_reduction <add>, %11, %cst_10 [2] : vector<8x8x8xf32> to vector<8x8xf32>
    %13 = vector.shape_cast %12 : vector<8x8xf32> to vector<8x8x1xf32>
    %cst_11 = arith.constant 1.000000e+00 : f32
    %14 = vector.broadcast %cst_11 : f32 to vector<8x8x1xf32>
    %15 = arith.divf %14, %13 : vector<8x8x1xf32>
    %16 = vector.broadcast %15 : vector<8x8x1xf32> to vector<8x8x8xf32>
    %17 = arith.mulf %11, %16 : vector<8x8x8xf32>
    "tpu.trace_start"() <{level = 10 : i32, message = "bqk,bkd->bqd"}> : () -> ()
    %cst_12 = arith.constant dense<0.000000e+00> : vector<8x8x32xf32>
    %18 = tpu.matmul %17, %5, %cst_12 {dimension_numbers = #tpu.dot_dimension_numbers<[2], [1], [1], [2], [0, 0, 0, 1, 1, 2], [0], [0]>} : vector<8x8x8xf32>, vector<8x8x32xf32>, vector<8x8x32xf32> -> vector<8x8x32xf32>
    "tpu.trace_stop"() : () -> ()
    %c0_13 = arith.constant 0 : index
    %c0_14 = arith.constant 0 : index
    %c0_15 = arith.constant 0 : index
    %19 = vector.load %arg5[%c0_13, %c0_14, %c0_15] : memref<8x8x32xf32, #tpu.memory_space<vmem>>, vector<8x8x32xf32>
    tpu.vector_store %arg5[%c0_13, %c0_14, %c0_15], %18 {strides = array<i32>} : memref<8x8x32xf32, #tpu.memory_space<vmem>>, vector<8x8x32xf32>,
    return
  }
  func.func @transform_0(%arg0: i32) -> i32 {
    %c0_i32 = arith.constant 0 : i32
    %c0_i32_0 = arith.constant 0 : i32
    return %c0_i32 : i32
  }
  func.func @transform_1(%arg0: i32) -> (i32, i32, i32) {
    %c0_i32 = arith.constant 0 : i32
    %c0_i32_0 = arith.constant 0 : i32
    %c0_i32_1 = arith.constant 0 : i32
    return %arg0, %c0_i32, %c0_i32_0 : i32, i32, i32
  }
  func.func @transform_2(%arg0: i32) -> (i32, i32, i32) {
    %c0_i32 = arith.constant 0 : i32
    %c0_i32_0 = arith.constant 0 : i32
    %c0_i32_1 = arith.constant 0 : i32
    return %arg0, %c0_i32, %c0_i32_0 : i32, i32, i32
  }
  func.func @transform_3(%arg0: i32) -> (i32, i32, i32) {
    %c0_i32 = arith.constant 0 : i32
    %c0_i32_0 = arith.constant 0 : i32
    %c0_i32_1 = arith.constant 0 : i32
    return %arg0, %c0_i32, %c0_i32_0 : i32, i32, i32
  }
  func.func @transform_4(%arg0: i32) -> (i32, i32, i32) {
    %c0_i32 = arith.constant 0 : i32
    %c0_i32_0 = arith.constant 0 : i32
    %c0_i32_1 = arith.constant 0 : i32
    return %arg0, %c0_i32, %c0_i32_0 : i32, i32, i32
  }
}

</mosaic_0001>

<bundles_post_ra>
// kernel: tpu_custom_call.1
= control target key start
LH: loop header
LB: loop body
LE: loop exit
PB: predicated region body
PF: predicated region fallthrough
CT: control target
= control target key end

     0   :  { %10 = vsyncpa [#allocation4], 0  ;;  %s1069_s0 = inlined_call_operand.<no memory space> [shape: f32[1], index: 0, kind: input, shape index: {}]   ;;  %s1070_s1 = inlined_call_operand.hbm [shape: f32[8,8,32], index: 1, kind: input, shape index: {}]   ;;  %s1071_s2 = inlined_call_operand.hbm [shape: f32[8,8,32], index: 2, kind: input, shape index: {}]   ;;  %s1072_s3 = inlined_call_operand.hbm [shape: f32[8,8,32], index: 3, kind: input, shape index: {}]   ;;  %s1073_s4 = inlined_call_operand.hbm [shape: f32[8,8,32], index: 4, kind: output, shape index: {}]  }
   0x1   :  { %11 = vsyncpa [#allocation7], 0 }
   0x2   :  { %12 = vsyncpa [#allocation5], 0  ;;  %s32_s17 = sshll.u32 %s1071_s2, 4  ;;  %s886_s18 = smov [#allocation6]   ;;  %s33_s17 = int_to_ptr.hbm [resolvable:$true] %s32_s17 }
   0x3   :  { %s34_s19 = sshll.u32 %s886_s18, 4  ;;  %s19_s22 = sshll.u32 %s1070_s1, 4  ;;  %s35_s19 = int_to_ptr.vmem [resolvable:$true] %s34_s19  ;;  %s20_s22 = int_to_ptr.hbm [resolvable:$true] %s19_s22 }
   0x4   :  { %s887_s23 = smov 128   ;;  %s888_s24 = smov 8  }
   0x5   :  { %40 = dma.hbm_to_vmem [thread:$0]  %s33_s17, 1024, %s35_s19, [#allocation7], %s887_s23, %s887_s23, %s888_s24  }
   0x6   :  { %s889_s25 = smov [#allocation3]   ;;  %s45_s2 = sshll.u32 %s1072_s3, 4  ;;  %s46_s2 = int_to_ptr.hbm [resolvable:$true] %s45_s2 }
   0x7   :  { %s21_s26 = sshll.u32 %s889_s25, 4  ;;  %s890_s1 = smov [#allocation8]   ;;  %s22_s26 = int_to_ptr.vmem [resolvable:$true] %s21_s26 }
   0x8   :  { %27 = dma.hbm_to_vmem [thread:$0]  %s20_s22, 1024, %s22_s26, [#allocation4], %s887_s23, %s887_s23, %s888_s24  }
   0x9   :  { %s47_s29 = sshll.u32 %s890_s1, 4  ;;  %s48_s29 = int_to_ptr.vmem [resolvable:$true] %s47_s29 }
   0xa   :  { %53 = dma.hbm_to_vmem [thread:$0]  %s46_s2, 1024, %s48_s29, [#allocation7], %s887_s23, %s887_s23, %s888_s24  }
   0xb   :  { %880 = dma.done.wait [#allocation4], 1024  }
   0xc   :  { %881 = vsyncadd [#allocation4], 4294966272 }
   0xd   :  { %882 = dma.done.wait [#allocation7], 2048  }
   0xe   :  { %883 = vsyncadd [#allocation7], 4294965248  ;;  %vm100_vm0 = vcmask 261120   ;;  %v75_v0 = vstv %s1069_s0  ;;  %v84_v1 = vld [vmem:[#allocation6] sm:$0xff]  ;;  %v86_v2 = vld [vmem:[#allocation6 + $0x10] sm:$0xff]  ;;  %vm309_vm1 = vcmask 64512  }
   0xf   :  { %v67_v3 = vld [vmem:[#allocation3] sm:$0xff]  ;;  %722 = vmatpush.xpose.msk.msra.mxu0 %vm100_vm0, %v84_v1  ;;  %726 = vmatpush.xpose.msk.msra.mxu2 %vm100_vm0, %v86_v2  ;;  %v69_v5 = vld [vmem:[#allocation3 + $0x10] sm:$0xff]  ;;  %v85_v7 = vld [vmem:[#allocation6 + $0x8] sm:$0xff]  ;;  %s891_s0 = smov [#allocation9]   ;;  %s708_s8 = sshll.u32 %s1073_s4, 4  ;;  %s709_s8 = int_to_ptr.hbm [resolvable:$true] %s708_s8 }
  0x10   :  { %v76_v4 = vmul.f32 %v75_v0, %v67_v3  ;;  %v90_v6 = vld [vmem:[#allocation6 + $0x30] sm:$0xff]  ;;  %v78_v8 = vmul.f32 %v75_v0, %v69_v5  ;;  %724 = vmatpush.xpose.msk.msra.mxu1 %vm100_vm0, %v85_v7  ;;  %v87_v9 = vld [vmem:[#allocation6 + $0x18] sm:$0xff]  ;;  %v68_v10 = vld [vmem:[#allocation3 + $0x8] sm:$0xff]  ;;  %s706_s5 = sshll.u32 %s891_s0, 4  ;;  %s707_s5 = int_to_ptr.vmem [resolvable:$true] %s706_s5 }
  0x11   :  { %v70_v11 = vld [vmem:[#allocation3 + $0x18] sm:$0xff]  ;;  %728 = vmatpush.xpose.msk.msra.mxu3 %vm100_vm0, %v87_v9  ;;  %v77_v12 = vmul.f32 %v75_v0, %v68_v10  ;;  %v89_v15 = vld [vmem:[#allocation6 + $0x28] sm:$0xff]  ;;  %v88_v16 = vld [vmem:[#allocation6 + $0x20] sm:$0xff] }
  0x12   :  { %v79_v13 = vmul.f32 %v75_v0, %v70_v11  ;;  %v91_v14 = vld [vmem:[#allocation6 + $0x38] sm:$0xff]  ;;  %723 = vmatmul.msk.f32.vlgmr.msra.gmra.mxu0 %vm100_vm0, %v76_v4  ;;  %727 = vmatmul.msk.f32.vlgmr.msra.gmra.mxu2 %vm100_vm0, %v78_v8  ;;  %v73_v17 = vld [vmem:[#allocation3 + $0x30] sm:$0xff]  ;;  %v71_v18 = vld [vmem:[#allocation3 + $0x20] sm:$0xff] }
  0x13   :  { %734 = vmatpush.xpose.msk.msrb.mxu2 %vm100_vm0, %v90_v6  ;;  %725 = vmatmul.msk.f32.vlgmr.msra.gmra.mxu1 %vm100_vm0, %v77_v12  ;;  %v72_v19 = vld [vmem:[#allocation3 + $0x28] sm:$0xff]  ;;  %v74_v20 = vld [vmem:[#allocation3 + $0x38] sm:$0xff]  ;;  %v82_v21 = vmul.f32 %v75_v0, %v73_v17  ;;  %v80_v22 = vmul.f32 %v75_v0, %v71_v18  ;;  %v92_v17 = vld [vmem:[#allocation8] sm:$0xff] }
  0x14   :  { %729 = vmatmul.msk.f32.vlgmr.msra.gmra.mxu3 %vm100_vm0, %v79_v13  ;;  %732 = vmatpush.xpose.msk.msrb.mxu1 %vm100_vm0, %v89_v15  ;;  %v81_v23 = vmul.f32 %v75_v0, %v72_v19  ;;  %v83_v24 = vmul.f32 %v75_v0, %v74_v20  ;;  %v94_v18 = vld [vmem:[#allocation8 + $0x10] sm:$0xff] }
  0x15   :  { %736 = vmatpush.xpose.msk.msrb.mxu3 %vm100_vm0, %v91_v14  ;;  %730 = vmatpush.xpose.msk.msrb.mxu0 %vm100_vm0, %v88_v16 }
  0x17   :  { %574 = vmatpush.msra.mxu2 %v94_v18 }
  0x19   :  { %528 = vmatpush.msra.mxu0 %v92_v17 }
  0x1a   :  { %735 = vmatmul.msk.f32.vlgmr.msrb.gmra.mxu2 %vm100_vm0, %v82_v21  ;;  %731 = vmatmul.msk.f32.vlgmr.msrb.gmra.mxu0 %vm100_vm0, %v80_v22  ;;  %v95_v21 = vld [vmem:[#allocation8 + $0x18] sm:$0xff]  ;;  %v93_v22 = vld [vmem:[#allocation8 + $0x8] sm:$0xff] }
  0x1b   :  { %733 = vmatmul.msk.f32.vlgmr.msrb.gmra.mxu1 %vm100_vm0, %v81_v23  ;;  %597 = vmatpush.msra.mxu3 %v95_v21 }
  0x1c   :  { %737 = vmatmul.msk.f32.vlgmr.msrb.gmra.mxu3 %vm100_vm0, %v83_v24  ;;  %551 = vmatpush.msra.mxu1 %v93_v22 }
  0x8f   :  { %v124_v25 = vpop.f32.mrf.mxu0 }
  0x90   :  { %v310_v26 = vsel %vm309_vm1, %v124_v25, -inf  ;;  %v150_v27 = vpop.f32.mrf.mxu1 }
  0x91   :  { %311 = vmax.xlane.f32.xlu1 %v310_v26  ;;  %v313_v30 = vsel %vm309_vm1, %v150_v27, -inf }
  0x95   :  { %v176_v28 = vpop.f32.mrf.mxu2 }
  0x96   :  { %v316_v29 = vsel %vm309_vm1, %v176_v28, -inf }
  0x97   :  { %317 = vmax.xlane.f32.xlu0 %v316_v29  ;;  %v202_v31 = vpop.f32.mrf.mxu3  ;;  %v228_v37 = vpop.f32.mrf.mxu0 }
  0x98   :  { %v254_v32 = vpop.f32.mrf.mxu1  ;;  %v319_v33 = vsel %vm309_vm1, %v202_v31, -inf  ;;  %v322_v40 = vsel %vm309_vm1, %v228_v37, -inf }
  0x99   :  { %314 = vmax.xlane.f32.xlu1 %v313_v30  ;;  %v325_v36 = vsel %vm309_vm1, %v254_v32, -inf }
  0x9d   :  { %v280_v34 = vpop.f32.mrf.mxu2 }
  0x9e   :  { %v328_v35 = vsel %vm309_vm1, %v280_v34, -inf }
  0x9f   :  { %320 = vmax.xlane.f32.xlu0 %v319_v33  ;;  %329 = vmax.xlane.f32.xlu2 %v328_v35  ;;  %v306_v38 = vpop.f32.mrf.mxu3  ;;  %v99_v35 = vld [vmem:[#allocation8 + $0x38] sm:$0xff] }
  0xa0   :  { %v331_v39 = vsel %vm309_vm1, %v306_v38, -inf  ;;  %689 = vmatpush.msrb.mxu3 %v99_v35 }
  0xa1   :  { %326 = vmax.xlane.f32.xlu1 %v325_v36  ;;  %v96_v36 = vld [vmem:[#allocation8 + $0x20] sm:$0xff] }
  0xa2   :  { %620 = vmatpush.msrb.mxu0 %v96_v36 }
  0xa7   :  { %332 = vmax.xlane.f32.xlu2 %v331_v39  ;;  %323 = vmax.xlane.f32.xlu0 %v322_v40  ;;  %v97_v40 = vld [vmem:[#allocation8 + $0x28] sm:$0xff] }
  0xa8   :  { %643 = vmatpush.msrb.mxu1 %v97_v40 }
 0x104   :  { %v312_v41 = vpop.xlane.xlu1 %311 }
 0x105   :  { %v334_v42 = vsub.f32 %v124_v25, %v312_v41 }
 0x107   :  { %v342_v43 = vmul.f32 1.442695, %v334_v42 }
 0x109   :  { %752 = vpow2.f32 %v342_v43 }
 0x10a   :  { %v318_v44 = vpop.xlane.xlu0 %317 }
 0x10b   :  { %v336_v45 = vsub.f32 %v176_v28, %v318_v44 }
 0x10c   :  { %v315_v46 = vpop.xlane.xlu1 %314 }
 0x10d   :  { %v346_v47 = vmul.f32 1.442695, %v336_v45  ;;  %v335_v48 = vsub.f32 %v150_v27, %v315_v46 }
 0x10f   :  { %v962_v49 = vpop.eup %752  ;;  %754 = vpow2.f32 %v346_v47  ;;  %v344_v51 = vmul.f32 1.442695, %v335_v48 }
 0x110   :  { %v358_v50 = vsel %vm309_vm1, %v962_v49, 0.0 }
 0x111   :  { %359 = vadd.xlane.f32.xlu1 %v358_v50  ;;  %756 = vpow2.f32 %v344_v51 }
 0x112   :  { %v321_v52 = vpop.xlane.xlu0 %320  ;;  %v330_v53 = vpop.xlane.xlu2 %329 }
 0x113   :  { %v337_v54 = vsub.f32 %v202_v31, %v321_v52  ;;  %v340_v57 = vsub.f32 %v280_v34, %v330_v53  ;;  %v98_v34 = vld [vmem:[#allocation8 + $0x30] sm:$0xff] }
 0x114   :  { %v327_v60 = vpop.xlane.xlu1 %326  ;;  %666 = vmatpush.msrb.mxu2 %v98_v34 }
 0x115   :  { %v966_v55 = vpop.eup %754  ;;  %v348_v56 = vmul.f32 1.442695, %v337_v54  ;;  %v354_v59 = vmul.f32 1.442695, %v340_v57  ;;  %v339_v3 = vsub.f32 %v254_v32, %v327_v60 }
 0x116   :  { %v364_v58 = vsel %vm309_vm1, %v966_v55, 0.0 }
 0x117   :  { %758 = vpow2.f32 %v348_v56  ;;  %365 = vadd.xlane.f32.xlu2 %v364_v58  ;;  %v970_v63 = vpop.eup %756  ;;  %v352_v8 = vmul.f32 1.442695, %v339_v3 }
 0x118   :  { %760 = vpow2.f32 %v354_v59  ;;  %v361_v6 = vsel %vm309_vm1, %v970_v63, 0.0 }
 0x11a   :  { %v333_v61 = vpop.xlane.xlu2 %332  ;;  %v324_v62 = vpop.xlane.xlu0 %323 }
 0x11b   :  { %v341_v0 = vsub.f32 %v306_v38, %v333_v61  ;;  %v338_v1 = vsub.f32 %v228_v37, %v324_v62 }
 0x11d   :  { %v972_v2 = vpop.eup %758  ;;  %v356_v4 = vmul.f32 1.442695, %v341_v0  ;;  %v350_v5 = vmul.f32 1.442695, %v338_v1 }
 0x11e   :  { %v367_v7 = vsel %vm309_vm1, %v972_v2, 0.0  ;;  %v978_v9 = vpop.eup %760 }
 0x11f   :  { %762 = vpow2.f32 %v356_v4  ;;  %362 = vadd.xlane.f32.xlu2 %v361_v6  ;;  %368 = vadd.xlane.f32.xlu0 %v367_v7  ;;  %v376_v13 = vsel %vm309_vm1, %v978_v9, 0.0 }
 0x120   :  { %764 = vpow2.f32 %v350_v5 }
 0x121   :  { %766 = vpow2.f32 %v352_v8 }
 0x125   :  { %v980_v10 = vpop.eup %762 }
 0x126   :  { %v982_v11 = vpop.eup %764  ;;  %v379_v12 = vsel %vm309_vm1, %v980_v10, 0.0 }
 0x127   :  { %380 = vadd.xlane.f32.xlu1 %v379_v12  ;;  %377 = vadd.xlane.f32.xlu0 %v376_v13  ;;  %v370_v14 = vsel %vm309_vm1, %v982_v11, 0.0  ;;  %v990_v15 = vpop.eup %766 }
 0x128   :  { %371 = vadd.xlane.f32.xlu2 %v370_v14  ;;  %v373_v16 = vsel %vm309_vm1, %v990_v15, 0.0 }
 0x12f   :  { %374 = vadd.xlane.f32.xlu0 %v373_v16 }
 0x184   :  { %v360_v19 = vpop.xlane.xlu1 %359 }
 0x185   :  { %768 = vrcp.f32 %v360_v19  ;;  %v393_v26 = vand.u32 2147483648, %v360_v19  ;;  %v391_v28 = vand.u32 2147483647, %v360_v19  ;;  %vm387_vm3 = vweird.f32 %v360_v19 }
 0x187   :  { %v394_v37 = vor.u32 1.1754944e-38, %v393_v26  ;;  %vm392_vm5 = vcmp.eq.f32.partialorder %v391_v28, 8.507059e+37 }
 0x18a   :  { %v366_v20 = vpop.xlane.xlu2 %365 }
 0x18b   :  { %v769_v23 = vpop.eup %768  ;;  %770 = vrcp.f32 %v366_v20  ;;  %v421_v45 = vand.u32 2147483647, %v366_v20  ;;  %v423_v46 = vand.u32 2147483648, %v366_v20  ;;  %vm417_vm7 = vweird.f32 %v366_v20 }
 0x18c   :  { %v383_v24 = vmul.f32 %v769_v23, %v360_v19  ;;  %vm388_vm2 = vweird.f32 %v769_v23 }
 0x18d   :  { %vm389_vm4 = vmor %vm387_vm3, %vm388_vm2  ;;  %vm422_vm9 = vcmp.eq.f32.partialorder %v421_v45, 8.507059e+37  ;;  %v424_v57 = vor.u32 1.1754944e-38, %v423_v46 }
 0x18e   :  { %v384_v25 = vsub.f32 1.0, %v383_v24 }
 0x190   :  { %v385_v27 = vmul.f32 %v769_v23, %v384_v25 }
 0x191   :  { %v771_v29 = vpop.eup %770 }
 0x192   :  { %v386_v30 = vadd.f32 %v769_v23, %v385_v27  ;;  %v413_v31 = vmul.f32 %v771_v29, %v366_v20  ;;  %v363_v32 = vpop.xlane.xlu2 %362  ;;  %v369_v33 = vpop.xlane.xlu0 %368  ;;  %vm418_vm6 = vweird.f32 %v771_v29 }
 0x193   :  { %772 = vrcp.f32 %v363_v32  ;;  %vm996_vm8 = vmor %vm417_vm7, %vm418_vm6  ;;  %v406_v59 = vand.u32 2147483647, %v363_v32  ;;  %v408_v60 = vand.u32 2147483648, %v363_v32  ;;  %v436_v62 = vand.u32 2147483647, %v369_v33 }
 0x194   :  { %v390_v38 = vsel %vm389_vm4, %v769_v23, %v386_v30  ;;  %v414_v39 = vsub.f32 1.0, %v413_v31  ;;  %774 = vrcp.f32 %v369_v33  ;;  %v438_v3 = vand.u32 2147483648, %v369_v33 }
 0x195   :  { %v395_v41 = vsel %vm392_vm5, %v394_v37, %v390_v38  ;;  %vm402_vm12 = vweird.f32 %v363_v32  ;;  %vm432_vm13 = vweird.f32 %v369_v33  ;;  %vm407_vm15 = vcmp.eq.f32.partialorder %v406_v59, 8.507059e+37 }
 0x196   :  { %v415_v42 = vmul.f32 %v771_v29, %v414_v39  ;;  %v502_v43 = vmul.f32 %v962_v49, %v395_v41  ;;  %v409_v7 = vor.u32 1.1754944e-38, %v408_v60  ;;  %vm437_vm3 = vcmp.eq.f32.partialorder %v436_v62, 8.507059e+37 }
 0x197   :  { %v439_v14 = vor.u32 1.1754944e-38, %v438_v3 }
 0x198   :  { %v416_v44 = vadd.f32 %v771_v29, %v415_v42  ;;  %738 = vmatmul.msk.f32.vlgmr.msra.gmra.mxu0 %vm309_vm1, %v502_v43 }
 0x199   :  { %v773_v47 = vpop.eup %772 }
 0x19a   :  { %v775_v48 = vpop.eup %774  ;;  %v398_v51 = vmul.f32 %v773_v47, %v363_v32  ;;  %v1000_v52 = vpop.xlane.xlu1 %380  ;;  %v420_v49 = vsel %vm996_vm8, %v771_v29, %v416_v44  ;;  %vm403_vm10 = vweird.f32 %v773_v47 }
 0x19b   :  { %v1002_v53 = vpop.xlane.xlu0 %377  ;;  %v428_v54 = vmul.f32 %v775_v48, %v369_v33  ;;  %776 = vrcp.f32 %v1000_v52  ;;  %v1007_v56 = vpop.xlane.xlu2 %371  ;;  %v425_v0 = vsel %vm422_vm9, %v424_v57, %v420_v49  ;;  %vm433_vm11 = vweird.f32 %v775_v48  ;;  %vm404_vm14 = vmor %vm402_vm12, %vm403_vm10 }
 0x19c   :  { %v399_v58 = vsub.f32 1.0, %v398_v51  ;;  %778 = vrcp.f32 %v1007_v56  ;;  %v504_v12 = vmul.f32 %v966_v55, %v425_v0  ;;  %vm434_vm2 = vmor %vm432_vm13, %vm433_vm11  ;;  %vm492_vm4 = vweird.f32 %v1000_v52 }
 0x19d   :  { %v429_v61 = vsub.f32 1.0, %v428_v54  ;;  %780 = vrcp.f32 %v1002_v53  ;;  %v496_v55 = vand.u32 2147483647, %v1000_v52  ;;  %v498_v25 = vand.u32 2147483648, %v1000_v52 }
 0x19e   :  { %v400_v1 = vmul.f32 %v773_v47, %v399_v58  ;;  %740 = vmatmul.msk.f32.vlgmr.msra.gmra.mxu2 %vm309_vm1, %v504_v12  ;;  %vm447_vm5 = vweird.f32 %v1007_v56  ;;  %v451_v26 = vand.u32 2147483647, %v1007_v56  ;;  %v453_v31 = vand.u32 2147483648, %v1007_v56 }
 0x19f   :  { %v430_v4 = vmul.f32 %v775_v48, %v429_v61  ;;  %v481_v32 = vand.u32 2147483647, %v1002_v53  ;;  %v483_v33 = vand.u32 2147483648, %v1002_v53  ;;  %vm497_vm9 = vcmp.eq.f32.partialorder %v496_v55, 8.507059e+37 }
 0x1a0   :  { %v401_v5 = vadd.f32 %v773_v47, %v400_v1  ;;  %v499_v38 = vor.u32 1.1754944e-38, %v498_v25  ;;  %vm1032_vm10 = vcmp.eq.f32.partialorder %v451_v26, 8.507059e+37  ;;  %v454_v44 = vor.u32 1.1754944e-38, %v453_v31 }
 0x1a1   :  { %v777_v6 = vpop.eup %776  ;;  %v431_v8 = vadd.f32 %v775_v48, %v430_v4  ;;  %vm477_vm13 = vweird.f32 %v1002_v53 }
 0x1a2   :  { %v405_v13 = vsel %vm404_vm14, %v773_v47, %v401_v5  ;;  %v488_v16 = vmul.f32 %v777_v6, %v1000_v52  ;;  %v779_v18 = vpop.eup %778  ;;  %vm493_vm6 = vweird.f32 %v777_v6  ;;  %vm482_vm14 = vcmp.eq.f32.partialorder %v481_v32, 8.507059e+37 }
 0x1a3   :  { %v1013_v17 = vpop.xlane.xlu0 %374  ;;  %v410_v19 = vsel %vm407_vm15, %v409_v7, %v405_v13  ;;  %v435_v20 = vsel %vm434_vm2, %v775_v48, %v431_v8  ;;  %v443_v23 = vmul.f32 %v779_v18, %v1007_v56  ;;  %v781_v24 = vpop.eup %780  ;;  %vm448_vm7 = vweird.f32 %v779_v18  ;;  %vm494_vm8 = vmor %vm492_vm4, %vm493_vm6 }
 0x1a4   :  { %782 = vrcp.f32 %v1013_v17  ;;  %v440_v21 = vsel %vm437_vm3, %v439_v14, %v435_v20  ;;  %v489_v22 = vsub.f32 1.0, %v488_v16  ;;  %v503_v27 = vmul.f32 %v970_v63, %v410_v19  ;;  %vm449_vm12 = vmor %vm447_vm5, %vm448_vm7 }
 0x1a5   :  { %v444_v29 = vsub.f32 1.0, %v443_v23  ;;  %v473_v30 = vmul.f32 %v781_v24, %v1002_v53  ;;  %v505_v34 = vmul.f32 %v972_v2, %v440_v21  ;;  %vm478_vm11 = vweird.f32 %v781_v24 }
 0x1a6   :  { %v490_v28 = vmul.f32 %v777_v6, %v489_v22  ;;  %739 = vmatmul.msk.f32.vlgmr.msra.gmra.mxu1 %vm309_vm1, %v503_v27  ;;  %v484_v47 = vor.u32 1.1754944e-38, %v483_v33  ;;  %vm479_vm15 = vmor %vm477_vm13, %vm478_vm11  ;;  %v466_v52 = vand.u32 2147483647, %v1013_v17  ;;  %v468_v49 = vand.u32 2147483648, %v1013_v17 }
 0x1a7   :  { %v445_v36 = vmul.f32 %v779_v18, %v444_v29  ;;  %v474_v37 = vsub.f32 1.0, %v473_v30  ;;  %741 = vmatmul.msk.f32.vlgmr.msra.gmra.mxu3 %vm309_vm1, %v505_v34  ;;  %vm462_vm3 = vweird.f32 %v1013_v17 }
 0x1a8   :  { %v491_v35 = vadd.f32 %v777_v6, %v490_v28  ;;  %v469_v59 = vor.u32 1.1754944e-38, %v468_v49  ;;  %vm467_vm5 = vcmp.eq.f32.partialorder %v466_v52, 8.507059e+37 }
 0x1a9   :  { %v446_v41 = vadd.f32 %v779_v18, %v445_v36  ;;  %v475_v2 = vmul.f32 %v781_v24, %v474_v37 }
 0x1aa   :  { %v783_v63 = vpop.eup %782  ;;  %v495_v40 = vsel %vm494_vm8, %v777_v6, %v491_v35 }
 0x1ab   :  { %v458_v42 = vmul.f32 %v783_v63, %v1013_v17  ;;  %v500_v43 = vsel %vm497_vm9, %v499_v38, %v495_v40  ;;  %v450_v45 = vsel %vm449_vm12, %v779_v18, %v446_v41  ;;  %v476_v46 = vadd.f32 %v781_v24, %v475_v2 }
 0x1ac   :  { %v509_v50 = vmul.f32 %v980_v10, %v500_v43  ;;  %v455_v51 = vsel %vm1032_vm10, %v454_v44, %v450_v45  ;;  %vm463_vm2 = vweird.f32 %v783_v63 }
 0x1ad   :  { %v459_v48 = vsub.f32 1.0, %v458_v42  ;;  %v506_v54 = vmul.f32 %v982_v11, %v455_v51  ;;  %v480_v56 = vsel %vm479_vm15, %v781_v24, %v476_v46  ;;  %vm464_vm4 = vmor %vm462_vm3, %vm463_vm2 }
 0x1ae   :  { %v485_v57 = vsel %vm482_vm14, %v484_v47, %v480_v56 }
 0x1af   :  { %v460_v53 = vmul.f32 %v783_v63, %v459_v48  ;;  %742 = vmatmul.msk.f32.vlgmr.msrb.gmra.mxu0 %vm309_vm1, %v506_v54  ;;  %v508_v10 = vmul.f32 %v978_v9, %v485_v57  ;;  %745 = vmatmul.msk.f32.vlgmr.msrb.gmra.mxu3 %vm309_vm1, %v509_v50 }
 0x1b1   :  { %v461_v58 = vadd.f32 %v783_v63, %v460_v53  ;;  %744 = vmatmul.msk.f32.vlgmr.msrb.gmra.mxu2 %vm309_vm1, %v508_v10 }
 0x1b3   :  { %v465_v60 = vsel %vm464_vm4, %v783_v63, %v461_v58 }
 0x1b4   :  { %v470_v11 = vsel %vm467_vm5, %v469_v59, %v465_v60 }
 0x1b5   :  { %v507_v61 = vmul.f32 %v990_v15, %v470_v11 }
 0x1b7   :  { %743 = vmatmul.msk.f32.vlgmr.msrb.gmra.mxu1 %vm309_vm1, %v507_v61 }
 0x215   :  { %v530_v62 = vpop.f32.mrf.mxu0 }
 0x216   :  { %694 = vst.msk [vmem:[#allocation9] sm:$0xff] %vm100_vm0, %v530_v62 }
 0x221   :  { %v576_v9 = vpop.f32.mrf.mxu2 }
 0x222   :  { %696 = vst.msk [vmem:[#allocation9 + $0x10] sm:$0xff] %vm100_vm0, %v576_v9 }
 0x223   :  { %v553_v0 = vpop.f32.mrf.mxu1 }
 0x224   :  { %695 = vst.msk [vmem:[#allocation9 + $0x8] sm:$0xff] %vm100_vm0, %v553_v0 }
 0x22a   :  { %v599_v1 = vpop.f32.mrf.mxu3 }
 0x22b   :  { %697 = vst.msk [vmem:[#allocation9 + $0x18] sm:$0xff] %vm100_vm0, %v599_v1 }
 0x22c   :  { %v622_v3 = vpop.f32.mrf.mxu0 }
 0x22d   :  { %698 = vst.msk [vmem:[#allocation9 + $0x20] sm:$0xff] %vm100_vm0, %v622_v3 }
 0x232   :  { %v691_v4 = vpop.f32.mrf.mxu3 }
 0x233   :  { %701 = vst.msk [vmem:[#allocation9 + $0x38] sm:$0xff] %vm100_vm0, %v691_v4 }
 0x234   :  { %v645_v15 = vpop.f32.mrf.mxu1  ;;  %v668_v5 = vpop.f32.mrf.mxu2 }
 0x235   :  { %699 = vst.msk [vmem:[#allocation9 + $0x28] sm:$0xff] %vm100_vm0, %v645_v15 }
 0x236   :  { %700 = vst.msk [vmem:[#allocation9 + $0x30] sm:$0xff] %vm100_vm0, %v668_v5 }
 0x237   :  { %714 = dma.vmem_to_hbm [thread:$0]  %s707_s5, 1024, %s709_s8, [#allocation5], %s887_s23, %s887_s23, %s888_s24  }
 0x238   :  { %884 = dma.done.wait [#allocation5], 1024  }
 0x239   :  { %885 = vsyncadd [#allocation5], 4294966272 }
 0x23a   :  { %719 = vsyncpa [#allocation4], 1 }
 0x23b   :  { %720 = vsyncpa [#allocation7], 1 }
 0x23c   :  { %721 = vsyncpa [#allocation5], 1 }

</bundles_post_ra>
